<compile_context>
chip_gen: v5e
topology: v5e:2x2
jax: 0.10.0
libtpu: 0.0.40
codegen_flags: <defaults>
</compile_context>

<pallas_src>
import functools

import numpy as np
import jax
import jax.numpy as jnp
from jax import lax
from jax.experimental import pallas as pl
from jax.experimental.pallas import tpu as pltpu

_LANE = 128


def _round_up(v, m):
    return ((v + m - 1) // m) * m


def qnet_kernel(x_ref, w1_ref, b1_ref, w2_ref, b2_ref, w3_ref, b3_ref, *out_refs,
                emit_q, emit_qmax):
    cd = w1_ref.dtype  # MXU input dtype (bf16 by default); accumulation is f32.
    # Layer 1: contract the state axis of both operands -> (H, TB).  Mosaic does the
    # small operand transpose in VMEM; x never takes an extra HBM pass in the wrapper.
    xc = x_ref[...].astype(cd)                           # (TB, S)
    h = lax.dot_general(w1_ref[...], xc, (((1,), (1,)), ((), ())),
                        preferred_element_type=jnp.float32)          # (H, TB)
    h = jnp.maximum(h + b1_ref[...], 0.0).astype(cd)     # fused bias+ReLU+cast (1 pass)
    # Layer 2: (H, H) @ (H, TB) -> (H, TB)
    h = jnp.dot(w2_ref[...], h, preferred_element_type=jnp.float32)
    h = jnp.maximum(h + b2_ref[...], 0.0).astype(cd)
    # Output layer: (A, H) @ (H, TB) -> (A, TB), no activation.
    q = jnp.dot(w3_ref[...], h, preferred_element_type=jnp.float32) + b3_ref[...]

    i = 0
    if emit_q:
        out_refs[i][...] = q.astype(out_refs[i].dtype)
        i += 1
    if emit_qmax:
        # Fused max-Q over actions (cheap sublane reduce) for TD-target consumers.
        out_refs[i][...] = jnp.max(q, axis=0, keepdims=True).astype(out_refs[i].dtype)


def target_q_network(x, params, *, compute_dtype=jnp.bfloat16, block_batch=16384,
                     min_grid_steps=2, return_q=True, return_max_q=False,
                     q_transposed=False):
    """Forward pass of TargetQNetwork.

    x: (B, state_size) f32.  params: w* (out, in), b* (out, 1).
    Returns q (B, A) by default; optionally max-Q over actions and/or q in the
    kernel-native lane-dense (A, B) layout (q_transposed=True) to avoid the
    final HBM transpose when the consumer does not need PyTorch's layout.
    """
    if not (return_q or return_max_q):
        raise ValueError("need at least one of return_q / return_max_q")
    w1, b1, w2, b2, w3, b3 = (params[k] for k in ("w1", "b1", "w2", "b2", "w3", "b3"))
    B, S = x.shape
    H = w1.shape[0]
    A = w3.shape[0]
    cd_size = np.dtype(compute_dtype).itemsize

    # VMEM working-set bytes per batch column: double-buffered streamed tiles plus the
    # implicitly materialized f32 h1/h2 and their bf16 copies (per perf review).
    bytes_per_col = (2 * S * np.dtype(x.dtype).itemsize            # x tile, double-buffered
                     + (2 * A * 4 if return_q else 0)              # q out, double-buffered
                     + (2 * 4 if return_max_q else 0)              # qmax out
                     + 2 * H * (4 + cd_size)                       # h1/h2 f32 + bf16 casts
                     + S * cd_size + A * 4 + 32)                   # x cast, q temp, slack

    # Batch-tile selection: as big as possible (amortize ~0.35us/step), at least
    # min_grid_steps tiles (v7x megacore), capped by a portable VMEM budget.
    if B <= _LANE:
        TB = B                                    # single (possibly partial) tile
    else:
        tb_cap = max(_LANE, (min(block_batch, B) // _LANE) * _LANE)
        vmem_cap = max(_LANE, ((28 << 20) // bytes_per_col) // _LANE * _LANE)
        tb_cap = min(tb_cap, vmem_cap)
        steps = max(min_grid_steps, pl.cdiv(B, tb_cap))
        TB = max(_LANE, _round_up(pl.cdiv(B, steps), _LANE))
        TB = min(TB, tb_cap)
    grid = (pl.cdiv(B, TB),)                      # boundary block is masked by Pallas

    # Wrapper-side casts touch only the tiny weights/biases (a few KB).
    w1c, w2c, w3c = (w.astype(compute_dtype) for w in (w1, w2, w3))
    b1f, b2f, b3f = (b.astype(jnp.float32) for b in (b1, b2, b3))

    weight_bytes = (H * S + H * H + A * H) * cd_size + (2 * H + A) * 4
    vmem_limit = int(min(max(bytes_per_col * TB + 2 * weight_bytes + (2 << 20),
                             16 << 20), 32 << 20))

    const = lambda i: (0, 0)   # weights/biases: one DMA, VMEM-resident across the grid
    in_specs = [
        pl.BlockSpec((TB, S), lambda i: (i, 0)),   # x streamed in native (B, S) layout
        pl.BlockSpec((H, S), const),
        pl.BlockSpec((H, 1), const),
        pl.BlockSpec((H, H), const),
        pl.BlockSpec((H, 1), const),
        pl.BlockSpec((A, H), const),
        pl.BlockSpec((A, 1), const),
    ]

    out_shapes, out_specs = [], []
    if return_q:
        out_shapes.append(jax.ShapeDtypeStruct((A, B), jnp.float32))
        out_specs.append(pl.BlockSpec((A, TB), lambda i: (0, i)))
    if return_max_q:
        out_shapes.append(jax.ShapeDtypeStruct((1, B), jnp.float32))
        out_specs.append(pl.BlockSpec((1, TB), lambda i: (0, i)))

    outs = pl.pallas_call(
        functools.partial(qnet_kernel, emit_q=return_q, emit_qmax=return_max_q),
        out_shape=tuple(out_shapes),
        grid=grid,
        in_specs=in_specs,
        out_specs=tuple(out_specs),
        compiler_params=pltpu.CompilerParams(
            dimension_semantics=("parallel",),   # v7x: batch tiles shard over both TCs
            vmem_limit_bytes=vmem_limit,         # sized to the actual footprint
        ),
    )(x, w1c, b1f, w2c, b2f, w3c, b3f)
    if not isinstance(outs, (tuple, list)):
        outs = (outs,)

    results = []
    idx = 0
    if return_q:
        qt = outs[idx]; idx += 1
        results.append(qt if q_transposed else qt.T)   # (B, A) matches the nn.Module
    if return_max_q:
        results.append(outs[idx][0])                   # (B,)
    return results[0] if len(results) == 1 else tuple(results)


def init_params(key, state_size, num_actions, hidden=32):
    # nn.Linear-style init: U(-1/sqrt(fan_in), 1/sqrt(fan_in)); weights (out, in).
    ks = jax.random.split(key, 6)

    def uni(k, shape, fan_in):
        bound = 1.0 / jnp.sqrt(jnp.float32(fan_in))
        return jax.random.uniform(k, shape, jnp.float32, -bound, bound)

    return {
        "w1": uni(ks[0], (hidden, state_size), state_size),
        "b1": uni(ks[1], (hidden, 1), state_size),
        "w2": uni(ks[2], (hidden, hidden), hidden),
        "b2": uni(ks[3], (hidden, 1), hidden),
        "w3": uni(ks[4], (num_actions, hidden), hidden),
        "b3": uni(ks[5], (num_actions, 1), hidden),
    }


def ref_forward(x, params, compute_dtype):
    # Pure-JAX reference mirroring the kernel's bf16-matmul / f32-epilogue math.
    cd = compute_dtype
    w1, b1, w2, b2, w3, b3 = (params[k] for k in ("w1", "b1", "w2", "b2", "w3", "b3"))
    h1 = jnp.maximum(
        jnp.dot(x.astype(cd), w1.T.astype(cd), preferred_element_type=jnp.float32) + b1.T, 0.0)
    h2 = jnp.maximum(
        jnp.dot(h1.astype(cd), w2.T.astype(cd), preferred_element_type=jnp.float32) + b2.T, 0.0)
    return jnp.dot(h2.astype(cd), w3.T.astype(cd), preferred_element_type=jnp.float32) + b3.T


if __name__ == "__main__":
    state_size, num_actions, batch = 8, 4, 300  # non-multiple batch exercises masking
    key = jax.random.PRNGKey(0)
    pkey, xkey = jax.random.split(key)
    params = init_params(pkey, state_size, num_actions)
    x = jax.random.normal(xkey, (batch, state_size), jnp.float32)

    # Default path: large tile, >=2 grid steps (both v7x TCs), q in (B, A).
    q = target_q_network(x, params)
    # Small tile -> multi-step pipelined grid + boundary masking + fused max-Q.
    q_small, q_max = target_q_network(x, params, block_batch=128, return_max_q=True)
    # TD-target path: max-Q only, no full-q HBM stream at all.
    q_max_only = target_q_network(x, params, return_q=False, return_max_q=True)
    q, q_small, q_max, q_max_only = jax.block_until_ready((q, q_small, q_max, q_max_only))

    q_ref = ref_forward(x, params, jnp.bfloat16)
    assert q.shape == (batch, num_actions)
    assert q_small.shape == (batch, num_actions)
    assert q_max.shape == (batch,) and q_max_only.shape == (batch,)
    assert jnp.allclose(q, q_ref, atol=1e-3, rtol=1e-3)
    assert jnp.allclose(q_small, q_ref, atol=1e-3, rtol=1e-3)
    assert jnp.allclose(q_max, jnp.max(q_ref, axis=-1), atol=1e-3, rtol=1e-3)
    assert jnp.allclose(q_max_only, q_max, atol=1e-3, rtol=1e-3)

    print("KERNEL_OK")
</pallas_src>

<mosaic_0001>
module attributes {stable_mosaic.version = 11 : i64} {
  func.func @qnet_kernel(%arg0: i32, %arg1: memref<256x8xf32, #tpu.memory_space<vmem>>, %arg2: memref<32x8xbf16, #tpu.memory_space<vmem>>, %arg3: memref<32x1xf32, #tpu.memory_space<vmem>>, %arg4: memref<32x32xbf16, #tpu.memory_space<vmem>>, %arg5: memref<32x1xf32, #tpu.memory_space<vmem>>, %arg6: memref<4x32xbf16, #tpu.memory_space<vmem>>, %arg7: memref<4x1xf32, #tpu.memory_space<vmem>>, %arg8: memref<4x256xf32, #tpu.memory_space<vmem>>) attributes {dimension_semantics = [#tpu.dimension_semantics<parallel>], iteration_bounds = array<i64: 2>, scalar_prefetch = 0 : i64, scratch_operands = 0 : i64, tpu.core_type = #tpu.core_type<tc>, window_params = [{transform_indices = @transform_0, window_bounds = array<i64: 256, 8>}, {pipeline_mode = #tpu.pipeline_mode<synchronous>, transform_indices = @transform_1, window_bounds = array<i64: 32, 8>}, {pipeline_mode = #tpu.pipeline_mode<synchronous>, transform_indices = @transform_2, window_bounds = array<i64: 32, 1>}, {pipeline_mode = #tpu.pipeline_mode<synchronous>, transform_indices = @transform_3, window_bounds = array<i64: 32, 32>}, {pipeline_mode = #tpu.pipeline_mode<synchronous>, transform_indices = @transform_4, window_bounds = array<i64: 32, 1>}, {pipeline_mode = #tpu.pipeline_mode<synchronous>, transform_indices = @transform_5, window_bounds = array<i64: 4, 32>}, {pipeline_mode = #tpu.pipeline_mode<synchronous>, transform_indices = @transform_6, window_bounds = array<i64: 4, 1>}, {transform_indices = @transform_7, window_bounds = array<i64: 4, 256>}]} {
    %c0 = arith.constant 0 : index
    %c0_0 = arith.constant 0 : index
    %0 = vector.load %arg1[%c0, %c0_0] : memref<256x8xf32, #tpu.memory_space<vmem>>, vector<256x8xf32>
    %1 = arith.truncf %0 : vector<256x8xf32> to vector<256x8xbf16>
    %c0_1 = arith.constant 0 : index
    %c0_2 = arith.constant 0 : index
    %2 = vector.load %arg2[%c0_1, %c0_2] : memref<32x8xbf16, #tpu.memory_space<vmem>>, vector<32x8xbf16>
    %cst = arith.constant dense<0.000000e+00> : vector<32x256xf32>
    %3 = tpu.matmul %2, %1, %cst {dimension_numbers = #tpu.dot_dimension_numbers<[1], [1], [0], [0], [0, 0, 1, 0], [], []>} : vector<32x8xbf16>, vector<256x8xbf16>, vector<32x256xf32> -> vector<32x256xf32>
    %c0_3 = arith.constant 0 : index
    %c0_4 = arith.constant 0 : index
    %4 = vector.load %arg3[%c0_3, %c0_4] : memref<32x1xf32, #tpu.memory_space<vmem>>, vector<32x1xf32>
    %5 = vector.broadcast %4 : vector<32x1xf32> to vector<32x256xf32>
    %6 = arith.addf %3, %5 : vector<32x256xf32>
    %cst_5 = arith.constant 0.000000e+00 : f32
    %7 = vector.broadcast %cst_5 : f32 to vector<32x256xf32>
    %8 = arith.maximumf %6, %7 : vector<32x256xf32>
    %9 = arith.truncf %8 : vector<32x256xf32> to vector<32x256xbf16>
    %c0_6 = arith.constant 0 : index
    %c0_7 = arith.constant 0 : index
    %10 = vector.load %arg4[%c0_6, %c0_7] : memref<32x32xbf16, #tpu.memory_space<vmem>>, vector<32x32xbf16>
    %cst_8 = arith.constant dense<0.000000e+00> : vector<32x256xf32>
    %11 = tpu.matmul %10, %9, %cst_8 {dimension_numbers = #tpu.dot_dimension_numbers<[1], [0], [0], [1], [0, 0, 1, 1], [], []>} : vector<32x32xbf16>, vector<32x256xbf16>, vector<32x256xf32> -> vector<32x256xf32>
    %c0_9 = arith.constant 0 : index
    %c0_10 = arith.constant 0 : index
    %12 = vector.load %arg5[%c0_9, %c0_10] : memref<32x1xf32, #tpu.memory_space<vmem>>, vector<32x1xf32>
    %13 = vector.broadcast %12 : vector<32x1xf32> to vector<32x256xf32>
    %14 = arith.addf %11, %13 : vector<32x256xf32>
    %cst_11 = arith.constant 0.000000e+00 : f32
    %15 = vector.broadcast %cst_11 : f32 to vector<32x256xf32>
    %16 = arith.maximumf %14, %15 : vector<32x256xf32>
    %17 = arith.truncf %16 : vector<32x256xf32> to vector<32x256xbf16>
    %c0_12 = arith.constant 0 : index
    %c0_13 = arith.constant 0 : index
    %18 = vector.load %arg6[%c0_12, %c0_13] : memref<4x32xbf16, #tpu.memory_space<vmem>>, vector<4x32xbf16>
    %cst_14 = arith.constant dense<0.000000e+00> : vector<4x256xf32>
    %19 = tpu.matmul %18, %17, %cst_14 {dimension_numbers = #tpu.dot_dimension_numbers<[1], [0], [0], [1], [0, 0, 1, 1], [], []>} : vector<4x32xbf16>, vector<32x256xbf16>, vector<4x256xf32> -> vector<4x256xf32>
    %c0_15 = arith.constant 0 : index
    %c0_16 = arith.constant 0 : index
    %20 = vector.load %arg7[%c0_15, %c0_16] : memref<4x1xf32, #tpu.memory_space<vmem>>, vector<4x1xf32>
    %21 = vector.broadcast %20 : vector<4x1xf32> to vector<4x256xf32>
    %22 = arith.addf %19, %21 : vector<4x256xf32>
    %c0_17 = arith.constant 0 : index
    %c0_18 = arith.constant 0 : index
    %23 = vector.load %arg8[%c0_17, %c0_18] : memref<4x256xf32, #tpu.memory_space<vmem>>, vector<4x256xf32>
    tpu.vector_store %arg8[%c0_17, %c0_18], %22 {strides = array<i32>} : memref<4x256xf32, #tpu.memory_space<vmem>>, vector<4x256xf32>,
    return
  }
  func.func @transform_0(%arg0: i32) -> (i32, i32) {
    %c0_i32 = arith.constant 0 : i32
    %c0_i32_0 = arith.constant 0 : i32
    return %arg0, %c0_i32 : i32, i32
  }
  func.func @transform_1(%arg0: i32) -> (i32, i32) {
    %c0_i32 = arith.constant 0 : i32
    %c0_i32_0 = arith.constant 0 : i32
    %c0_i32_1 = arith.constant 0 : i32
    return %c0_i32, %c0_i32_0 : i32, i32
  }
  func.func @transform_2(%arg0: i32) -> (i32, i32) {
    %c0_i32 = arith.constant 0 : i32
    %c0_i32_0 = arith.constant 0 : i32
    %c0_i32_1 = arith.constant 0 : i32
    return %c0_i32, %c0_i32_0 : i32, i32
  }
  func.func @transform_3(%arg0: i32) -> (i32, i32) {
    %c0_i32 = arith.constant 0 : i32
    %c0_i32_0 = arith.constant 0 : i32
    %c0_i32_1 = arith.constant 0 : i32
    return %c0_i32, %c0_i32_0 : i32, i32
  }
  func.func @transform_4(%arg0: i32) -> (i32, i32) {
    %c0_i32 = arith.constant 0 : i32
    %c0_i32_0 = arith.constant 0 : i32
    %c0_i32_1 = arith.constant 0 : i32
    return %c0_i32, %c0_i32_0 : i32, i32
  }
  func.func @transform_5(%arg0: i32) -> (i32, i32) {
    %c0_i32 = arith.constant 0 : i32
    %c0_i32_0 = arith.constant 0 : i32
    %c0_i32_1 = arith.constant 0 : i32
    return %c0_i32, %c0_i32_0 : i32, i32
  }
  func.func @transform_6(%arg0: i32) -> (i32, i32) {
    %c0_i32 = arith.constant 0 : i32
    %c0_i32_0 = arith.constant 0 : i32
    %c0_i32_1 = arith.constant 0 : i32
    return %c0_i32, %c0_i32_0 : i32, i32
  }
  func.func @transform_7(%arg0: i32) -> (i32, i32) {
    %c0_i32 = arith.constant 0 : i32
    %c0_i32_0 = arith.constant 0 : i32
    return %c0_i32, %arg0 : i32, i32
  }
}

</mosaic_0001>

<bundles_post_ra>
// kernel: tpu_custom_call.1
= control target key start
LH: loop header
LB: loop body
LE: loop exit
PB: predicated region body
PF: predicated region fallthrough
CT: control target
= control target key end

     0   :  { %12 = vsyncpa [#allocation3], 0  ;;  %s1133_s0 = inlined_call_operand.vmem [shape: f32[300,8], index: 0, kind: input, shape index: {}]   ;;  %s1134_s1 = inlined_call_operand.vmem [shape: bf16[32,8], index: 1, kind: input, shape index: {}]   ;;  %s1135_s2 = inlined_call_operand.vmem [shape: f32[32,1], index: 2, kind: input, shape index: {}]   ;;  %s1136_s3 = inlined_call_operand.vmem [shape: bf16[32,32], index: 3, kind: input, shape index: {}]   ;;  %s1137_s4 = inlined_call_operand.vmem [shape: f32[32,1], index: 4, kind: input, shape index: {}]   ;;  %s1138_s5 = inlined_call_operand.vmem [shape: bf16[4,32], index: 5, kind: input, shape index: {}]   ;;  %s1139_s6 = inlined_call_operand.vmem [shape: f32[4,1], index: 6, kind: input, shape index: {}]   ;;  %s1140_s7 = inlined_call_operand.hbm [shape: f32[4,300], index: 7, kind: output, shape index: {}]  }
   0x1   :  { %14 = vsyncpa [#allocation3 + $0x1], 0  ;;  %s923_s24 = smov 0   ;;  %s925_s25 = smov 0  }
   0x2   :  { %s927_s26 = smov 0   ;;  %s929_s27 = smov 0  }
   0x3 LB: > { %s944_s28 = sadd.s32 4294967295, %s879_s27   ;;  %s717_s29 = sadd.s32 4294967294, %s879_s27   ;;  %s879_s27 = sphi %s929_s27, %s1149_s27   ;;  %s875_s26 = sphi %s927_s26, %s1148_s26   ;;  %s871_s25 = sphi %s925_s25, %s1147_s25   ;;  %s867_s24 = sphi %s923_s24, %s1146_s24  }
   0x4   : > { %s948_s30 = sadd.s32 1, %s879_s27   ;;  %s179_s8 = sadd.s32 1, %s875_s26 }
   0x5   : > { %s176_s9 = ssub.s32 %s879_s27, %s948_s30  ;;  %p189_p0 = scmp.ne.s32.totalorder %s875_s26, %s871_s25 }
   0x6   : > { %p177_p1 = scmp.eq.s32.totalorder %s176_s9, 0  ;;  %p190_p2 = scmp.eq.s32.totalorder %s944_s28, 1 }
   0x7   : > { %p195_p3 = scmp.ne.s32.totalorder %s871_s25, %s867_s24  ;;  %p196_p4 = scmp.eq.s32.totalorder %s717_s29, 1 }
   0x8   : > { %s959_s10 = scalar_select %p177_p1, %s875_s26, %s179_s8  }
   0x9   : > { %p961_p5 = por %p190_p2, %p189_p0  ;;  %p965_p6 = por %p196_p4, %p195_p3 }
   0xa   : > { %p720_p7 = scmp.ge.s32.totalorder %s879_s27, 1  ;;  %p249_p8 = scmp.lt.s32.totalorder %s879_s27, 3 }
   0xc   : > { %p250_p9 = pnand %p720_p7, %p249_p8 }
   0xd   : > { %s722_s13 = sshll.u32 (!%p250_p9), %s944_s28, 5  ;;  %s282_s18 = sand.u32 (!%p250_p9), 1, %s871_s25  }
   0xe   : > { %253 = sbr.rel (%p250_p9) target bundleno = 593 (0x251), region = 48  ;;  %p290_p10 = scmp.lt.s32.totalorder (!%p250_p9), %s722_s13, 37 }
   0xf   : > { %s721_s19 = sshll.u32 (!%p250_p9), %s282_s18, 3  ;;  %s1078_s21 = scalar_lea.sflag (!%p250_p9), [#allocation3], %s282_s18 }
  0x10   : > { %s284_s20 = scalar_lea.vmem (!%p250_p9), [#allocation2], %s721_s19 }
  0x13   : > { %s1151_s13 = smov (!%p290_p10, %s722_s13), 37  ;;  %vm391_vm0 = vcmask 64512   ;;  %v359_v44 = vld [vmem:[%s1135_s2 + $0x10] sm:$0xff]  ;;  %v357_v45 = vld [vmem:[%s1135_s2] sm:$0xff]  ;;  %v881_v47 = vmov 0   ;;  %v360_v63 = vld [vmem:[%s1135_s2 + $0x18] sm:$0xff] }
  0x14   : > { %s723_s14 = sshll.u32 %s1151_s13, 3  ;;  %804 = vset.pattern.permute.xlu1 %v881_v47  ;;  %803 = vset.pattern.permute.xlu0 %v881_v47  ;;  %vm534_vm1 = vcmask 261120   ;;  %vm630_vm2 = vcmask 1043456   ;;  %s751_s22 = sshll.u32 (%p961_p5), %s944_s28, 1 }
  0x15   : > { %s975_s17 = scalar_lea.vmem %s1133_s0, %s723_s14  ;;  %363 = vperm.xlu1 %804, %v357_v45   ;;  %373 = vperm.xlu0 %803, %v359_v44   ;;  %v592_v44 = vld [vmem:[%s1139_s6] sm:$0xf]  ;;  %v762_v45 = vld [vmem:[%s1136_s3 + $0x8] sm:$0xff]  ;;  %s643_s23 = ssub.s32 (%p961_p5), 3, %s751_s22 }
  0x16   : > { %v319_v0 = vld [vmem:[%s975_s17 + $0x70] sm:$0xff]  ;;  %v320_v1 = vld [vmem:[%s975_s17 + $0x78] sm:$0xff]  ;;  %v317_v6 = vld [vmem:[%s975_s17 + $0x60] sm:$0xff]  ;;  %805 = vset.pattern.permute.xlu2 %v881_v47  ;;  %p644_p11 = scmp.lt.s32.totalorder (%p961_p5), %s643_s23, 2 }
  0x17   : > { %v335_v2 = vld [vmem:[%s975_s17 + $0xf0] sm:$0xff]  ;;  %v344_v3 = vpack.c.bf16 %v320_v1, %v319_v0  ;;  %v336_v4 = vld [vmem:[%s975_s17 + $0xf8] sm:$0xff]  ;;  %v318_v7 = vld [vmem:[%s975_s17 + $0x68] sm:$0xff] }
  0x18   : > { %v352_v5 = vpack.c.bf16 %v336_v4, %v335_v2  ;;  %v333_v9 = vld [vmem:[%s975_s17 + $0xe0] sm:$0xff]  ;;  %v334_v10 = vld [vmem:[%s975_s17 + $0xe8] sm:$0xff]  ;;  %v343_v12 = vpack.c.bf16 %v318_v7, %v317_v6  ;;  %v315_v16 = vld [vmem:[%s975_s17 + $0x50] sm:$0xff] }
  0x19   : > { %v420_v8 = vsel %vm391_vm0, %v344_v3, 0  ;;  %v351_v13 = vpack.c.bf16 %v334_v10, %v333_v9  ;;  %v316_v17 = vld [vmem:[%s975_s17 + $0x58] sm:$0xff]  ;;  %v331_v18 = vld [vmem:[%s975_s17 + $0xd0] sm:$0xff]  ;;  %v313_v24 = vld [vmem:[%s975_s17 + $0x40] sm:$0xff] }
  0x1a   : > { %446 = vmatpush.bf16.xpose.msra.mxu0 %v420_v8  ;;  %v444_v11 = vsel %vm391_vm0, %v352_v5, 0  ;;  %v417_v14 = vsel %vm391_vm0, %v343_v12, 0  ;;  %v332_v19 = vld [vmem:[%s975_s17 + $0xd8] sm:$0xff]  ;;  %v342_v20 = vpack.c.bf16 %v316_v17, %v315_v16  ;;  %v314_v25 = vld [vmem:[%s975_s17 + $0x48] sm:$0xff]  ;;  %v329_v26 = vld [vmem:[%s975_s17 + $0xc0] sm:$0xff] }
  0x1b   : > { %465 = vmatpush.bf16.xpose.msra.mxu1 %v444_v11  ;;  %v441_v15 = vsel %vm391_vm0, %v351_v13, 0  ;;  %v350_v21 = vpack.c.bf16 %v332_v19, %v331_v18  ;;  %v330_v27 = vld [vmem:[%s975_s17 + $0xc8] sm:$0xff]  ;;  %v341_v28 = vpack.c.bf16 %v314_v25, %v313_v24  ;;  %v311_v32 = vld [vmem:[%s975_s17 + $0x30] sm:$0xff]  ;;  %v312_v33 = vld [vmem:[%s975_s17 + $0x38] sm:$0xff] }
  0x1c   : > { %v414_v22 = vsel %vm391_vm0, %v342_v20, 0  ;;  %v349_v29 = vpack.c.bf16 %v330_v27, %v329_v26  ;;  %v327_v34 = vld [vmem:[%s975_s17 + $0xb0] sm:$0xff]  ;;  %v328_v35 = vld [vmem:[%s975_s17 + $0xb8] sm:$0xff]  ;;  %v340_v36 = vpack.c.bf16 %v312_v33, %v311_v32  ;;  %v309_v40 = vld [vmem:[%s975_s17 + $0x20] sm:$0xff] }
  0x1d   : > { %v438_v23 = vsel %vm391_vm0, %v350_v21, 0  ;;  %v411_v30 = vsel %vm391_vm0, %v341_v28, 0  ;;  %v348_v37 = vpack.c.bf16 %v328_v35, %v327_v34  ;;  %v310_v41 = vld [vmem:[%s975_s17 + $0x28] sm:$0xff]  ;;  %v325_v42 = vld [vmem:[%s975_s17 + $0xa0] sm:$0xff]  ;;  %v307_v51 = vld [vmem:[%s975_s17 + $0x10] sm:$0xff]  ;;  %378 = vperm.xlu0 %803, %v360_v63  }
  0x1e   : > { %v435_v31 = vsel %vm391_vm0, %v349_v29, 0  ;;  %v408_v38 = vsel %vm391_vm0, %v340_v36, 0  ;;  %v326_v43 = vld [vmem:[%s975_s17 + $0xa8] sm:$0xff]  ;;  %v339_v46 = vpack.c.bf16 %v310_v41, %v309_v40  ;;  %v308_v52 = vld [vmem:[%s975_s17 + $0x18] sm:$0xff]  ;;  %v323_v53 = vld [vmem:[%s975_s17 + $0x90] sm:$0xff] }
  0x1f   : > { %v432_v39 = vsel %vm391_vm0, %v348_v37, 0  ;;  %v347_v48 = vpack.c.bf16 %v326_v43, %v325_v42  ;;  %v324_v54 = vld [vmem:[%s975_s17 + $0x98] sm:$0xff]  ;;  %v338_v55 = vpack.c.bf16 %v308_v52, %v307_v51  ;;  %v305_v59 = vld [vmem:[%s975_s17] sm:$0xff]  ;;  %v306_v60 = vld [vmem:[%s975_s17 + $0x8] sm:$0xff] }
  0x20   : > { %v405_v49 = vsel %vm391_vm0, %v339_v46, 0  ;;  %v346_v56 = vpack.c.bf16 %v324_v54, %v323_v53  ;;  %v321_v61 = vld [vmem:[%s975_s17 + $0x80] sm:$0xff]  ;;  %v322_v62 = vld [vmem:[%s975_s17 + $0x88] sm:$0xff]  ;;  %v337_v1 = vpack.c.bf16 %v306_v60, %v305_v59  ;;  %v502_v19 = vld [vmem:[%s1137_s4 + $0x10] sm:$0xff] }
  0x21   : > { %v429_v50 = vsel %vm391_vm0, %v347_v48, 0  ;;  %v402_v57 = vsel %vm391_vm0, %v338_v55, 0  ;;  %v358_v0 = vld [vmem:[%s1135_s2 + $0x8] sm:$0xff]  ;;  %v345_v2 = vpack.c.bf16 %v322_v62, %v321_v61  ;;  %v500_v5 = vld [vmem:[%s1137_s4] sm:$0xff]  ;;  %516 = vperm.xlu2 %805, %v502_v19   ;;  %v503_v36 = vld [vmem:[%s1137_s4 + $0x18] sm:$0xff] }
  0x22   : > { %447 = vmatpush.bf16.xpose.msra.mxu0 %v417_v14  ;;  %v426_v58 = vsel %vm391_vm0, %v346_v56, 0  ;;  %368 = vperm.xlu1 %804, %v358_v0   ;;  %v399_v3 = vsel %vm391_vm0, %v337_v1, 0  ;;  %v501_v6 = vld [vmem:[%s1137_s4 + $0x8] sm:$0xff]  ;;  %v759_v7 = vld [vmem:[%s1134_s1] sm:$0xff] }
  0x23   : > { %466 = vmatpush.bf16.xpose.msra.mxu1 %v441_v15  ;;  %v423_v4 = vsel %vm391_vm0, %v345_v2, 0  ;;  %v760_v8 = vld [vmem:[%s1134_s1 + $0x8] sm:$0xff]  ;;  %v761_v43 = vld [vmem:[%s1136_s3] sm:$0xff] }
  0x25   : > { %506 = vperm.xlu0 %803, %v500_v5  }
  0x29   : > { %521 = vperm.xlu2 %805, %v503_v36  }
  0x2a   : > { %448 = vmatpush.bf16.xpose.msra.mxu0 %v414_v22  ;;  %511 = vperm.xlu1 %804, %v501_v6  }
  0x2b   : > { %467 = vmatpush.bf16.xpose.msra.mxu1 %v438_v23 }
  0x31   : > { %595 = vperm.xlu2 %805, %v592_v44  }
  0x32   : > { %449 = vmatpush.bf16.xpose.msra.mxu0 %v411_v30 }
  0x33   : > { %468 = vmatpush.bf16.xpose.msra.mxu1 %v435_v31 }
  0x3a   : > { %450 = vmatpush.bf16.xpose.msra.mxu0 %v408_v38 }
  0x3b   : > { %469 = vmatpush.bf16.xpose.msra.mxu1 %v432_v39 }
  0x42   : > { %451 = vmatpush.bf16.xpose.msra.mxu0 %v405_v49 }
  0x43   : > { %470 = vmatpush.bf16.xpose.msra.mxu1 %v429_v50 }
  0x4a   : > { %452 = vmatpush.bf16.xpose.msra.mxu0 %v402_v57 }
  0x4b   : > { %471 = vmatpush.bf16.xpose.msra.mxu1 %v426_v58 }
  0x52   : > { %453 = vmatpush.bf16.xpose.msra.mxu0 %v399_v3 }
  0x53   : > { %472 = vmatpush.bf16.xpose.msra.mxu1 %v423_v4 }
  0x59   : > { %732 = vmatmul.msk.bf16.vlgmr.msra.gmra.mxu0 %vm391_vm0, %v759_v7 }
  0x5a   : > { %734 = vmatmul.msk.bf16.vlgmr.msra.gmra.mxu1 %vm391_vm0, %v759_v7 }
  0x69   : > { %733 = vmatmul.msk.bf16.gmra.mxu0 %vm391_vm0, %v760_v8 }
  0x6a   : > { %735 = vmatmul.msk.bf16.gmra.mxu1 %vm391_vm0, %v760_v8 }
  0x7b   : > { %v517_v50 = vpop.permute.xlu2 %516 }
  0x83   : > { %v522_v55 = vpop.permute.xlu2 %521 }
  0x87   : > { %v364_v13 = vpop.permute.xlu1 %363  ;;  %v374_v14 = vpop.permute.xlu0 %373 }
  0x8f   : > { %v379_v20 = vpop.permute.xlu0 %378 }
  0x94   : > { %v369_v17 = vpop.permute.xlu1 %368 }
  0x97   : > { %v507_v61 = vpop.permute.xlu0 %506 }
  0x9c   : > { %v512_v53 = vpop.permute.xlu1 %511 }
  0xd6   : > { %v455_v9 = vpop.f32.mrf.mxu0 }
  0xd7   : > { %v474_v10 = vpop.f32.mrf.mxu1  ;;  %v456_v28 = vadd.f32 %v455_v9, %v364_v13 }
  0xd8   : > { %v475_v31 = vadd.f32 %v474_v10, %v364_v13 }
  0xd9   : > { %v484_v39 = vmax.f32 %v456_v28, 0.0 }
  0xda   : > { %v485_v40 = vmax.f32 %v475_v31, 0.0 }
  0xde   : > { %v457_v11 = vpop.f32.mrf.mxu0 }
  0xdf   : > { %v476_v12 = vpop.f32.mrf.mxu1  ;;  %v458_v23 = vadd.f32 %v457_v11, %v369_v17 }
  0xe0   : > { %v477_v26 = vadd.f32 %v476_v12, %v369_v17 }
  0xe1   : > { %v486_v34 = vmax.f32 %v458_v23, 0.0 }
  0xe2   : > { %v487_v37 = vmax.f32 %v477_v26, 0.0 }
  0xe3   : > { %v492_v41 = vpack.c.bf16 %v486_v34, %v484_v39 }
  0xe4   : > { %v493_v42 = vpack.c.bf16 %v487_v37, %v485_v40 }
  0xe6   : > { %v460_v15 = vpop.f32.mrf.mxu0 }
  0xe7   : > { %v479_v16 = vpop.f32.mrf.mxu1  ;;  %v461_v18 = vadd.f32 %v460_v15, %v374_v14 }
  0xe8   : > { %v480_v21 = vadd.f32 %v479_v16, %v374_v14  ;;  %v591_v14 = vld [vmem:[%s1138_s5] sm:$0x3]  ;;  %v596_v16 = vpop.permute.xlu2 %595 }
  0xe9   : > { %v488_v29 = vmax.f32 %v461_v18, 0.0 }
  0xea   : > { %v489_v32 = vmax.f32 %v480_v21, 0.0 }
  0xee   : > { %v462_v22 = vpop.f32.mrf.mxu0 }
  0xef   : > { %v463_v24 = vadd.f32 %v462_v22, %v379_v20  ;;  %v481_v25 = vpop.f32.mrf.mxu1 }
  0xf0   : > { %v482_v27 = vadd.f32 %v481_v25, %v379_v20 }
  0xf1   : > { %v490_v30 = vmax.f32 %v463_v24, 0.0 }
  0xf2   : > { %v491_v33 = vmax.f32 %v482_v27, 0.0 }
  0xf3   : > { %v494_v35 = vpack.c.bf16 %v490_v30, %v488_v29 }
  0xf4   : > { %v495_v38 = vpack.c.bf16 %v491_v33, %v489_v32 }
  0xf5   : > { %547 = vmatpush.bf16.msra.mxu2 %v494_v35 }
  0xf6   : > { %566 = vmatpush.bf16.msra.mxu3 %v495_v38 }
  0xf9   : > { %548 = vmatpush.bf16.msra.mxu2 %v492_v41 }
  0xfa   : > { %567 = vmatpush.bf16.msra.mxu3 %v493_v42 }
  0xfc   : > { %744 = vmatmul.msk.bf16.vlgmr.msra.gmra.mxu2 %vm534_vm1, %v761_v43 }
  0xfd   : > { %746 = vmatmul.msk.bf16.vlgmr.msra.gmra.mxu3 %vm534_vm1, %v761_v43 }
 0x10c   : > { %745 = vmatmul.msk.bf16.gmra.mxu2 %vm534_vm1, %v762_v45 }
 0x10d   : > { %747 = vmatmul.msk.bf16.gmra.mxu3 %vm534_vm1, %v762_v45 }
 0x17f   : > { %v550_v46 = vpop.f32.mrf.mxu2 }
 0x180   : > { %v569_v47 = vpop.f32.mrf.mxu3  ;;  %v551_v0 = vadd.f32 %v550_v46, %v507_v61 }
 0x181   : > { %v570_v3 = vadd.f32 %v569_v47, %v507_v61 }
 0x182   : > { %v579_v10 = vmax.f32 %v551_v0, 0.0 }
 0x183   : > { %v580_v11 = vmax.f32 %v570_v3, 0.0 }
 0x187   : > { %v552_v48 = vpop.f32.mrf.mxu2 }
 0x188   : > { %v571_v49 = vpop.f32.mrf.mxu3  ;;  %v553_v58 = vadd.f32 %v552_v48, %v512_v53 }
 0x189   : > { %v572_v62 = vadd.f32 %v571_v49, %v512_v53 }
 0x18a   : > { %v581_v6 = vmax.f32 %v553_v58, 0.0 }
 0x18b   : > { %v582_v8 = vmax.f32 %v572_v62, 0.0 }
 0x18c   : > { %v587_v12 = vpack.c.bf16 %v581_v6, %v579_v10 }
 0x18d   : > { %v588_v13 = vpack.c.bf16 %v582_v8, %v580_v11 }
 0x18f   : > { %v555_v51 = vpop.f32.mrf.mxu2 }
 0x190   : > { %v574_v52 = vpop.f32.mrf.mxu3  ;;  %v556_v54 = vadd.f32 %v555_v51, %v517_v50 }
 0x191   : > { %v575_v56 = vadd.f32 %v574_v52, %v517_v50 }
 0x192   : > { %v583_v1 = vmax.f32 %v556_v54, 0.0 }
 0x193   : > { %v584_v4 = vmax.f32 %v575_v56, 0.0 }
 0x197   : > { %v557_v57 = vpop.f32.mrf.mxu2 }
 0x198   : > { %v558_v59 = vadd.f32 %v557_v57, %v522_v55  ;;  %v576_v60 = vpop.f32.mrf.mxu3 }
 0x199   : > { %v577_v63 = vadd.f32 %v576_v60, %v522_v55 }
 0x19a   : > { %v585_v2 = vmax.f32 %v558_v59, 0.0 }
 0x19b   : > { %v586_v5 = vmax.f32 %v577_v63, 0.0 }
 0x19c   : > { %v589_v7 = vpack.c.bf16 %v585_v2, %v583_v1 }
 0x19d   : > { %v590_v9 = vpack.c.bf16 %v586_v5, %v584_v4 }
 0x19e   : > { %607 = vmatpush.bf16.msrb.mxu2 %v589_v7 }
 0x19f   : > { %620 = vmatpush.bf16.msrb.mxu3 %v590_v9 }
 0x1a2   : > { %608 = vmatpush.bf16.msrb.mxu2 %v587_v12 }
 0x1a3   : > { %621 = vmatpush.bf16.msrb.mxu3 %v588_v13 }
 0x1a5   : > { %748 = vmatmul.msk.bf16.vlgmr.msrb.gmra.mxu2 %vm534_vm1, %v591_v14 }
 0x1a6   : > { %749 = vmatmul.msk.bf16.vlgmr.msrb.gmra.mxu3 %vm534_vm1, %v591_v14 }
 0x228   : > { %v610_v15 = vpop.f32.mrf.mxu2 }
 0x229   : > { %v623_v17 = vpop.f32.mrf.mxu3  ;;  %v611_v19 = vadd.f32 %v610_v15, %v596_v16 }
 0x22a   : > { %v624_v18 = vadd.f32 %v623_v17, %v596_v16 }
 0x22c   : > { %v629_v20 = vrot.slane %v624_v18, 4 }
 0x22d   : > { %641 = sbr.rel (!%p961_p5) target bundleno = 593 (0x251), region = 52 }
 0x22e   : > { %v631_v21 = vsel %vm630_vm2, %v611_v19, %v629_v20 }
 0x22f   : > { %633 = vst [vmem:[%s284_s20] sm:$0xff] %v631_v21 }
 0x230   : > { %v612_v22 = vpop.f32.mrf.mxu2 }
 0x231   : > { %v625_v23 = vpop.f32.mrf.mxu3 }
 0x232   : > { %s1153_s23 = smov (!%p644_p11, %s643_s23), 2 }
 0x233   : > { %s752_s29 = sshll.u32 %s1153_s23, 2 }
 0x234   : > { %s647_s8 = ssub.s32 8, %s752_s29 }
 0x235   : > { %s648_s9 = sshll.u32 %s647_s8, 4 }
 0x236   : > { %649 = vsyncadd %s1078_s21, %s648_s9  ;;  %p1087_p12 = scmp.ne.s32.totalorder %s752_s29, 0  ;;  %s763_s11 = sshll.u32 %s944_s28, 3 }
 0x237   : > { %s652_s16 = scalar_lea.hbm %s1140_s7, %s763_s11  ;;  %s1141_s17 = sshll.u32 %s1153_s23, 6 }
 0x238   : > { %s1096_s18 = sshll.u32 %s284_s20, 4  ;;  %s657_s19 = sshll.u32 %s652_s16, 4  ;;  %s656_s18 = int_to_ptr.vmem [resolvable:$true] %s1096_s18  ;;  %s658_s19 = int_to_ptr.hbm [resolvable:$true] %s657_s19 }
 0x239   : > { %s806_s22 = sshra.s32 %s656_s18, 4  ;;  %s808_s29 = sshrl.u32 %s1141_s17, 4  ;;  %s807_s22 = int_to_ptr.vmem [resolvable:$true] %s806_s22 }
 0x23a   : > { %s813_s8 = scalar_lea.vmem %s807_s22, %s808_s29  ;;  %s882_s28 = smov [#allocation2]  }
 0x23b   : > { %p814_p13 = scmp.ne.s32.totalorder %s807_s22, %s813_s8  ;;  %s817_s9 = scalar_lea.vmem %s882_s28, 16 }
 0x23c   : > { %p819_p2 = scmp.lt.s32.totalorder %s817_s9, %s813_s8 }
 0x23d   : > { %p815_p0 = pnand %p814_p13, %p1087_p12 }
 0x23f   : > { %p816_p1 = pneg %p815_p0 }
 0x241   : > { %p821_p3 = pnand %p819_p2, %p816_p1 }
 0x243   : > { %824 = shalt.err (!%p821_p3)
}
 0x244   : > { %s825_s20 = sshra.s32 %s658_s19, 4  ;;  %s836_s16 = scalar_lea.hbm %s1140_s7, 12  ;;  %s826_s20 = int_to_ptr.hbm [resolvable:$true] %s825_s20 }
 0x245   : > { %s832_s11 = scalar_lea.hbm %s826_s20, %s808_s29  ;;  %p837_p8 = scmp.lt.s32.totalorder %s826_s20, %s1140_s7 }
 0x246   : > { %p833_p4 = scmp.ne.s32.totalorder %s826_s20, %s832_s11  ;;  %p838_p9 = scmp.lt.s32.totalorder %s836_s16, %s832_s11 }
 0x248   : > { %p834_p5 = pnand %p833_p4, %p1087_p12  ;;  %p839_p10 = por %p838_p9, %p837_p8 }
 0x24a   : > { %p835_p7 = pneg %p834_p5 }
 0x24c   : > { %p840_p11 = pnand %p839_p10, %p835_p7 }
 0x24e   : > { %843 = shalt.err (!%p840_p11)
}
 0x24f   : > { %s1145_s29 = sshll.u32 %s1153_s23, 6 }
 0x250   : > { %660 = dma.vmem_to_hbm [thread:$0]  (%p1087_p12), %s656_s18, %s1145_s29, %s658_s19, %s1078_s21  }
 0x251 PF: > { %p769_p13 = scmp.ge.s32.totalorder %s879_s27, 2  ;;  %s669_s8 = sand.u32 1, %s867_s24  }
 0x252   : > { %s670_s17 = scalar_lea.sflag [#allocation3], %s669_s8 }
 0x253   : > { %p766_p0 = pnand %p769_p13, %p965_p6 }
 0x255   : > { %p767_p1 = pneg %p766_p0 }
 0x257   : > { %862 = dma.done.wait (%p767_p1), %s670_s17, 128  }
 0x258   : > { %864 = vsyncadd (%p767_p1), %s670_s17, 4294967168  ;;  %p17_p2 = scmp.ge.s32.totalorder %s948_s30, 4   ;;  %s1146_s24 = smov %s871_s25 }
 0x259   : > { %s1147_s25 = smov %s875_s26  ;;  %s1148_s26 = smov %s959_s10 }
 0x25a   : > { %s1149_s27 = smov %s948_s30  ;;  %19 = sbr.rel (!%p17_p2) target bundleno = 3 (0x3), region = 83 }
 0x25f   :  { %676 = vsyncpa [#allocation3], 1 }
 0x260   :  { %678 = vsyncpa [#allocation3 + $0x1], 1 }

</bundles_post_ra>
